<compile_context>
chip_gen: v6e
topology: v6e:2x2x1
jax: 0.10.0
libtpu: 0.0.40
codegen_flags: <defaults>
</compile_context>

<pallas_src>
import jax
import jax.numpy as jnp
from jax.experimental import pallas as pl
from jax.experimental.pallas import tpu as pltpu


def make_fused_gat_kernel(heads1, c1, c2, negative_slope=0.2):
    """Fused conv1(relu) -> conv2 GAT forward. Layer 2 has heads=1, concat=False."""

    def _attention(adj, alpha_d_col, alpha_s_row, h_vals):
        # e[i, j] = LeakyReLU(alpha_dst[i] + alpha_src[j]), masked softmax over j.
        e = alpha_d_col + alpha_s_row                                  # [N, N]
        e = jnp.where(e > 0, e, negative_slope * e)                    # LeakyReLU
        e = jnp.where(adj > 0, e, -1e30)                               # mask non-edges
        e_max = jnp.max(e, axis=1, keepdims=True)
        p = jnp.exp(e - e_max)
        p = jnp.where(adj > 0, p, 0.0)                                 # safety re-mask
        denom = jnp.sum(p, axis=1, keepdims=True)
        att = p * pl.reciprocal(denom, approx=True)                    # EUP vrcp
        return jnp.dot(att, h_vals, preferred_element_type=jnp.float32)

    def kernel(x_ref, adj_ref, w1_ref, a1s_ref, a1d_ref, b1_ref,
               w2_ref, a2s_ref, a2d_ref, b2_ref, out_ref):
        x = x_ref[...]                                                 # [N, F_in]
        adj = adj_ref[...]                                             # [N, N]

        # ---------------- layer 1: GATConv(heads=heads1, concat=True) -------------
        # single lane-dense projection for all heads
        h_all = jnp.dot(x, w1_ref[...], preferred_element_type=jnp.float32)  # [N, H*C1]

        # per-head attention logits for all heads via block-diagonal matmuls (MXU)
        alpha_s = jnp.dot(h_all, a1s_ref[...], preferred_element_type=jnp.float32)  # [N, H]
        alpha_d = jnp.dot(h_all, a1d_ref[...], preferred_element_type=jnp.float32)  # [N, H]
        alpha_s_t = jnp.transpose(alpha_s)                             # [H, N] (one XLU op)

        head_outs = []
        for h in range(heads1):
            out_h = _attention(
                adj,
                alpha_d[:, h:h + 1],                                   # [N, 1]
                alpha_s_t[h:h + 1, :],                                 # [1, N]
                h_all[:, h * c1:(h + 1) * c1],                         # [N, C1]
            )
            head_outs.append(out_h)

        # concat=True: single assembly + single bias add + single ReLU
        z = jnp.concatenate(head_outs, axis=1) if heads1 > 1 else head_outs[0]
        z = z + b1_ref[...]                                            # [N, H*C1]
        z = jnp.maximum(z, 0.0)                                        # F.relu between layers

        # ---------------- layer 2: GATConv(heads=1, concat=False) -----------------
        h2 = jnp.dot(z, w2_ref[...], preferred_element_type=jnp.float32)        # [N, C2]
        a2s = jnp.dot(h2, a2s_ref[...], preferred_element_type=jnp.float32)     # [N, 1]
        a2d = jnp.dot(h2, a2d_ref[...], preferred_element_type=jnp.float32)     # [N, 1]
        out2 = _attention(adj, a2d, jnp.transpose(a2s), h2)                      # [N, C2]

        # concat=False with 1 head -> mean over heads is identity
        out_ref[...] = out2 + b2_ref[...]

    return kernel


def gat_forward_fused(x, adj, params, *, heads, hidden_channels, out_channels):
    (w1, a1s_bd, a1d_bd, b1), (w2, a2s_bd, a2d_bd, b2) = params
    n = x.shape[0]
    kernel = make_fused_gat_kernel(heads, hidden_channels, out_channels)
    vmem = pl.BlockSpec(memory_space=pltpu.MemorySpace.VMEM)
    return pl.pallas_call(
        kernel,
        out_shape=jax.ShapeDtypeStruct((n, out_channels), jnp.float32),
        in_specs=[vmem] * 10,
        out_specs=vmem,
    )(x, adj, w1, a1s_bd, a1d_bd, b1, w2, a2s_bd, a2d_bd, b2)


# ------------------------------ JAX glue (outside kernel) ------------------------------

def edge_index_to_adj(edge_index, num_nodes):
    # adj[dst, src] = 1 for every edge (src -> dst); add self-loops (GATConv default).
    src, dst = edge_index[0], edge_index[1]
    adj = jnp.zeros((num_nodes, num_nodes), jnp.float32)
    adj = adj.at[dst, src].set(1.0)
    adj = adj.at[jnp.arange(num_nodes), jnp.arange(num_nodes)].set(1.0)
    return adj


def block_diag_att(a):
    # a: [heads, C] -> block-diagonal [heads*C, heads] so that
    # (h_all @ A)[:, h] == sum_c h_all[:, h*C + c] * a[h, c]
    heads, c = a.shape
    out = jnp.zeros((heads * c, heads), jnp.float32)
    for h in range(heads):
        out = out.at[h * c:(h + 1) * c, h].set(a[h])
    return out


def init_gatconv_params(key, f_in, c_out, heads):
    k1, k2, k3 = jax.random.split(key, 3)
    scale_w = (2.0 / (f_in + heads * c_out)) ** 0.5
    w = scale_w * jax.random.normal(k1, (f_in, heads * c_out), jnp.float32)
    a_src = 0.1 * jax.random.normal(k2, (heads, c_out), jnp.float32)
    a_dst = 0.1 * jax.random.normal(k3, (heads, c_out), jnp.float32)
    return w, block_diag_att(a_src), block_diag_att(a_dst)


if __name__ == "__main__":
    # small, module-consistent shapes
    num_nodes = 32
    in_channels = 16
    hidden_channels = 16
    out_channels = 8
    num_heads = 2

    key = jax.random.PRNGKey(0)
    kx, kp1, kp2 = jax.random.split(key, 3)

    # node features
    x = jax.random.normal(kx, (num_nodes, in_channels), jnp.float32)

    # deterministic ring graph (both directions)
    src = jnp.arange(num_nodes, dtype=jnp.int32)
    dst = (src + 1) % num_nodes
    edge_index = jnp.stack([jnp.concatenate([src, dst]),
                            jnp.concatenate([dst, src])], axis=0)   # [2, 2N]
    adj = edge_index_to_adj(edge_index, num_nodes)

    # parameters (deterministic init; biases kept 2D [1, D] for TPU-friendly layout)
    w1, a1s_bd, a1d_bd = init_gatconv_params(kp1, in_channels, hidden_channels, num_heads)
    b1 = jnp.zeros((1, num_heads * hidden_channels), jnp.float32)
    w2, a2s_bd, a2d_bd = init_gatconv_params(kp2, num_heads * hidden_channels, out_channels, 1)
    b2 = jnp.zeros((1, out_channels), jnp.float32)

    params = ((w1, a1s_bd, a1d_bd, b1), (w2, a2s_bd, a2d_bd, b2))

    out = gat_forward_fused(x, adj, params,
                            heads=num_heads,
                            hidden_channels=hidden_channels,
                            out_channels=out_channels)
    out = jax.block_until_ready(out)
    assert out.shape == (num_nodes, out_channels)
    print("KERNEL_OK")
</pallas_src>

<mosaic_0001>
module attributes {stable_mosaic.version = 11 : i64} {
  func.func @kernel(%arg0: memref<32x16xf32, #tpu.memory_space<vmem>>, %arg1: memref<32x32xf32, #tpu.memory_space<vmem>>, %arg2: memref<16x32xf32, #tpu.memory_space<vmem>>, %arg3: memref<32x2xf32, #tpu.memory_space<vmem>>, %arg4: memref<32x2xf32, #tpu.memory_space<vmem>>, %arg5: memref<1x32xf32, #tpu.memory_space<vmem>>, %arg6: memref<32x8xf32, #tpu.memory_space<vmem>>, %arg7: memref<8x1xf32, #tpu.memory_space<vmem>>, %arg8: memref<8x1xf32, #tpu.memory_space<vmem>>, %arg9: memref<1x8xf32, #tpu.memory_space<vmem>>, %arg10: memref<32x8xf32, #tpu.memory_space<vmem>>) attributes {dimension_semantics = [], scalar_prefetch = 0 : i64, scratch_operands = 0 : i64, tpu.core_type = #tpu.core_type<tc>} {
    %c0 = arith.constant 0 : index
    %c0_0 = arith.constant 0 : index
    %0 = vector.load %arg0[%c0, %c0_0] : memref<32x16xf32, #tpu.memory_space<vmem>>, vector<32x16xf32>
    %c0_1 = arith.constant 0 : index
    %c0_2 = arith.constant 0 : index
    %1 = vector.load %arg1[%c0_1, %c0_2] : memref<32x32xf32, #tpu.memory_space<vmem>>, vector<32x32xf32>
    %c0_3 = arith.constant 0 : index
    %c0_4 = arith.constant 0 : index
    %2 = vector.load %arg2[%c0_3, %c0_4] : memref<16x32xf32, #tpu.memory_space<vmem>>, vector<16x32xf32>
    %cst = arith.constant dense<0.000000e+00> : vector<32x32xf32>
    %3 = tpu.matmul %0, %2, %cst {dimension_numbers = #tpu.dot_dimension_numbers<[1], [0], [0], [1], [0, 0, 1, 1], [], []>} : vector<32x16xf32>, vector<16x32xf32>, vector<32x32xf32> -> vector<32x32xf32>
    %c0_5 = arith.constant 0 : index
    %c0_6 = arith.constant 0 : index
    %4 = vector.load %arg3[%c0_5, %c0_6] : memref<32x2xf32, #tpu.memory_space<vmem>>, vector<32x2xf32>
    %cst_7 = arith.constant dense<0.000000e+00> : vector<32x2xf32>
    %5 = tpu.matmul %3, %4, %cst_7 {dimension_numbers = #tpu.dot_dimension_numbers<[1], [0], [0], [1], [0, 0, 1, 1], [], []>} : vector<32x32xf32>, vector<32x2xf32>, vector<32x2xf32> -> vector<32x2xf32>
    %c0_8 = arith.constant 0 : index
    %c0_9 = arith.constant 0 : index
    %6 = vector.load %arg4[%c0_8, %c0_9] : memref<32x2xf32, #tpu.memory_space<vmem>>, vector<32x2xf32>
    %cst_10 = arith.constant dense<0.000000e+00> : vector<32x2xf32>
    %7 = tpu.matmul %3, %6, %cst_10 {dimension_numbers = #tpu.dot_dimension_numbers<[1], [0], [0], [1], [0, 0, 1, 1], [], []>} : vector<32x32xf32>, vector<32x2xf32>, vector<32x2xf32> -> vector<32x2xf32>
    %8 = tpu.transpose %5, [1, 0] : vector<32x2xf32> -> vector<2x32xf32>
    %9 = vector.extract_strided_slice %7 {offsets = [0, 0], sizes = [32, 1], strides = [1, 1]} : vector<32x2xf32> to vector<32x1xf32>
    %10 = vector.extract_strided_slice %8 {offsets = [0, 0], sizes = [1, 32], strides = [1, 1]} : vector<2x32xf32> to vector<1x32xf32>
    %11 = vector.extract_strided_slice %3 {offsets = [0, 0], sizes = [32, 16], strides = [1, 1]} : vector<32x32xf32> to vector<32x16xf32>
    %12 = vector.broadcast %9 : vector<32x1xf32> to vector<32x32xf32>
    %13 = vector.broadcast %10 : vector<1x32xf32> to vector<32x32xf32>
    %14 = arith.addf %12, %13 : vector<32x32xf32>
    %cst_11 = arith.constant 0.000000e+00 : f32
    %15 = vector.broadcast %cst_11 : f32 to vector<32x32xf32>
    %16 = arith.cmpf ogt, %14, %15 : vector<32x32xf32>
    %cst_12 = arith.constant 2.000000e-01 : f32
    %17 = vector.broadcast %cst_12 : f32 to vector<32x32xf32>
    %18 = arith.mulf %17, %14 : vector<32x32xf32>
    %19 = arith.select %16, %14, %18 : vector<32x32xi1>, vector<32x32xf32>
    %cst_13 = arith.constant 0.000000e+00 : f32
    %20 = vector.broadcast %cst_13 : f32 to vector<32x32xf32>
    %21 = arith.cmpf ogt, %1, %20 : vector<32x32xf32>
    %cst_14 = arith.constant -1.000000e+30 : f32
    %22 = vector.broadcast %cst_14 : f32 to vector<32x32xf32>
    %23 = arith.select %21, %19, %22 : vector<32x32xi1>, vector<32x32xf32>
    %cst_15 = arith.constant dense<0xFF800000> : vector<32xf32>
    %24 = vector.multi_reduction <maximumf>, %23, %cst_15 [1] : vector<32x32xf32> to vector<32xf32>
    %25 = vector.shape_cast %24 : vector<32xf32> to vector<32x1xf32>
    %26 = vector.broadcast %25 : vector<32x1xf32> to vector<32x32xf32>
    %27 = arith.subf %23, %26 : vector<32x32xf32>
    %28 = math.exp %27 : vector<32x32xf32>
    %cst_16 = arith.constant 0.000000e+00 : f32
    %29 = vector.broadcast %cst_16 : f32 to vector<32x32xf32>
    %30 = arith.cmpf ogt, %1, %29 : vector<32x32xf32>
    %cst_17 = arith.constant 0.000000e+00 : f32
    %31 = vector.broadcast %cst_17 : f32 to vector<32x32xf32>
    %32 = arith.select %30, %28, %31 : vector<32x32xi1>, vector<32x32xf32>
    %cst_18 = arith.constant dense<0.000000e+00> : vector<32xf32>
    %33 = vector.multi_reduction <add>, %32, %cst_18 [1] : vector<32x32xf32> to vector<32xf32>
    %34 = vector.shape_cast %33 : vector<32xf32> to vector<32x1xf32>
    %35 = tpu.reciprocal %34 {approx = true} : vector<32x1xf32> -> vector<32x1xf32>
    %36 = vector.broadcast %35 : vector<32x1xf32> to vector<32x32xf32>
    %37 = arith.mulf %32, %36 : vector<32x32xf32>
    %cst_19 = arith.constant dense<0.000000e+00> : vector<32x16xf32>
    %38 = tpu.matmul %37, %11, %cst_19 {dimension_numbers = #tpu.dot_dimension_numbers<[1], [0], [0], [1], [0, 0, 1, 1], [], []>} : vector<32x32xf32>, vector<32x16xf32>, vector<32x16xf32> -> vector<32x16xf32>
    %39 = vector.extract_strided_slice %7 {offsets = [0, 1], sizes = [32, 1], strides = [1, 1]} : vector<32x2xf32> to vector<32x1xf32>
    %40 = vector.extract_strided_slice %8 {offsets = [1, 0], sizes = [1, 32], strides = [1, 1]} : vector<2x32xf32> to vector<1x32xf32>
    %41 = vector.extract_strided_slice %3 {offsets = [0, 16], sizes = [32, 16], strides = [1, 1]} : vector<32x32xf32> to vector<32x16xf32>
    %42 = vector.broadcast %39 : vector<32x1xf32> to vector<32x32xf32>
    %43 = vector.broadcast %40 : vector<1x32xf32> to vector<32x32xf32>
    %44 = arith.addf %42, %43 : vector<32x32xf32>
    %cst_20 = arith.constant 0.000000e+00 : f32
    %45 = vector.broadcast %cst_20 : f32 to vector<32x32xf32>
    %46 = arith.cmpf ogt, %44, %45 : vector<32x32xf32>
    %cst_21 = arith.constant 2.000000e-01 : f32
    %47 = vector.broadcast %cst_21 : f32 to vector<32x32xf32>
    %48 = arith.mulf %47, %44 : vector<32x32xf32>
    %49 = arith.select %46, %44, %48 : vector<32x32xi1>, vector<32x32xf32>
    %cst_22 = arith.constant 0.000000e+00 : f32
    %50 = vector.broadcast %cst_22 : f32 to vector<32x32xf32>
    %51 = arith.cmpf ogt, %1, %50 : vector<32x32xf32>
    %cst_23 = arith.constant -1.000000e+30 : f32
    %52 = vector.broadcast %cst_23 : f32 to vector<32x32xf32>
    %53 = arith.select %51, %49, %52 : vector<32x32xi1>, vector<32x32xf32>
    %cst_24 = arith.constant dense<0xFF800000> : vector<32xf32>
    %54 = vector.multi_reduction <maximumf>, %53, %cst_24 [1] : vector<32x32xf32> to vector<32xf32>
    %55 = vector.shape_cast %54 : vector<32xf32> to vector<32x1xf32>
    %56 = vector.broadcast %55 : vector<32x1xf32> to vector<32x32xf32>
    %57 = arith.subf %53, %56 : vector<32x32xf32>
    %58 = math.exp %57 : vector<32x32xf32>
    %cst_25 = arith.constant 0.000000e+00 : f32
    %59 = vector.broadcast %cst_25 : f32 to vector<32x32xf32>
    %60 = arith.cmpf ogt, %1, %59 : vector<32x32xf32>
    %cst_26 = arith.constant 0.000000e+00 : f32
    %61 = vector.broadcast %cst_26 : f32 to vector<32x32xf32>
    %62 = arith.select %60, %58, %61 : vector<32x32xi1>, vector<32x32xf32>
    %cst_27 = arith.constant dense<0.000000e+00> : vector<32xf32>
    %63 = vector.multi_reduction <add>, %62, %cst_27 [1] : vector<32x32xf32> to vector<32xf32>
    %64 = vector.shape_cast %63 : vector<32xf32> to vector<32x1xf32>
    %65 = tpu.reciprocal %64 {approx = true} : vector<32x1xf32> -> vector<32x1xf32>
    %66 = vector.broadcast %65 : vector<32x1xf32> to vector<32x32xf32>
    %67 = arith.mulf %62, %66 : vector<32x32xf32>
    %cst_28 = arith.constant dense<0.000000e+00> : vector<32x16xf32>
    %68 = tpu.matmul %67, %41, %cst_28 {dimension_numbers = #tpu.dot_dimension_numbers<[1], [0], [0], [1], [0, 0, 1, 1], [], []>} : vector<32x32xf32>, vector<32x16xf32>, vector<32x16xf32> -> vector<32x16xf32>
    %69 = tpu.concatenate %38, %68 in 1 : vector<32x16xf32>, vector<32x16xf32> -> vector<32x32xf32>
    %c0_29 = arith.constant 0 : index
    %c0_30 = arith.constant 0 : index
    %70 = vector.load %arg5[%c0_29, %c0_30] : memref<1x32xf32, #tpu.memory_space<vmem>>, vector<1x32xf32>
    %71 = vector.broadcast %70 : vector<1x32xf32> to vector<32x32xf32>
    %72 = arith.addf %69, %71 : vector<32x32xf32>
    %cst_31 = arith.constant 0.000000e+00 : f32
    %73 = vector.broadcast %cst_31 : f32 to vector<32x32xf32>
    %74 = arith.maximumf %72, %73 : vector<32x32xf32>
    %c0_32 = arith.constant 0 : index
    %c0_33 = arith.constant 0 : index
    %75 = vector.load %arg6[%c0_32, %c0_33] : memref<32x8xf32, #tpu.memory_space<vmem>>, vector<32x8xf32>
    %cst_34 = arith.constant dense<0.000000e+00> : vector<32x8xf32>
    %76 = tpu.matmul %74, %75, %cst_34 {dimension_numbers = #tpu.dot_dimension_numbers<[1], [0], [0], [1], [0, 0, 1, 1], [], []>} : vector<32x32xf32>, vector<32x8xf32>, vector<32x8xf32> -> vector<32x8xf32>
    %c0_35 = arith.constant 0 : index
    %c0_36 = arith.constant 0 : index
    %77 = vector.load %arg7[%c0_35, %c0_36] : memref<8x1xf32, #tpu.memory_space<vmem>>, vector<8x1xf32>
    %cst_37 = arith.constant dense<0.000000e+00> : vector<32x1xf32>
    %78 = tpu.matmul %76, %77, %cst_37 {dimension_numbers = #tpu.dot_dimension_numbers<[1], [0], [0], [1], [0, 0, 1, 1], [], []>} : vector<32x8xf32>, vector<8x1xf32>, vector<32x1xf32> -> vector<32x1xf32>
    %c0_38 = arith.constant 0 : index
    %c0_39 = arith.constant 0 : index
    %79 = vector.load %arg8[%c0_38, %c0_39] : memref<8x1xf32, #tpu.memory_space<vmem>>, vector<8x1xf32>
    %cst_40 = arith.constant dense<0.000000e+00> : vector<32x1xf32>
    %80 = tpu.matmul %76, %79, %cst_40 {dimension_numbers = #tpu.dot_dimension_numbers<[1], [0], [0], [1], [0, 0, 1, 1], [], []>} : vector<32x8xf32>, vector<8x1xf32>, vector<32x1xf32> -> vector<32x1xf32>
    %81 = tpu.transpose %78, [1, 0] : vector<32x1xf32> -> vector<1x32xf32>
    %82 = vector.broadcast %80 : vector<32x1xf32> to vector<32x32xf32>
    %83 = vector.broadcast %81 : vector<1x32xf32> to vector<32x32xf32>
    %84 = arith.addf %82, %83 : vector<32x32xf32>
    %cst_41 = arith.constant 0.000000e+00 : f32
    %85 = vector.broadcast %cst_41 : f32 to vector<32x32xf32>
    %86 = arith.cmpf ogt, %84, %85 : vector<32x32xf32>
    %cst_42 = arith.constant 2.000000e-01 : f32
    %87 = vector.broadcast %cst_42 : f32 to vector<32x32xf32>
    %88 = arith.mulf %87, %84 : vector<32x32xf32>
    %89 = arith.select %86, %84, %88 : vector<32x32xi1>, vector<32x32xf32>
    %cst_43 = arith.constant 0.000000e+00 : f32
    %90 = vector.broadcast %cst_43 : f32 to vector<32x32xf32>
    %91 = arith.cmpf ogt, %1, %90 : vector<32x32xf32>
    %cst_44 = arith.constant -1.000000e+30 : f32
    %92 = vector.broadcast %cst_44 : f32 to vector<32x32xf32>
    %93 = arith.select %91, %89, %92 : vector<32x32xi1>, vector<32x32xf32>
    %cst_45 = arith.constant dense<0xFF800000> : vector<32xf32>
    %94 = vector.multi_reduction <maximumf>, %93, %cst_45 [1] : vector<32x32xf32> to vector<32xf32>
    %95 = vector.shape_cast %94 : vector<32xf32> to vector<32x1xf32>
    %96 = vector.broadcast %95 : vector<32x1xf32> to vector<32x32xf32>
    %97 = arith.subf %93, %96 : vector<32x32xf32>
    %98 = math.exp %97 : vector<32x32xf32>
    %cst_46 = arith.constant 0.000000e+00 : f32
    %99 = vector.broadcast %cst_46 : f32 to vector<32x32xf32>
    %100 = arith.cmpf ogt, %1, %99 : vector<32x32xf32>
    %cst_47 = arith.constant 0.000000e+00 : f32
    %101 = vector.broadcast %cst_47 : f32 to vector<32x32xf32>
    %102 = arith.select %100, %98, %101 : vector<32x32xi1>, vector<32x32xf32>
    %cst_48 = arith.constant dense<0.000000e+00> : vector<32xf32>
    %103 = vector.multi_reduction <add>, %102, %cst_48 [1] : vector<32x32xf32> to vector<32xf32>
    %104 = vector.shape_cast %103 : vector<32xf32> to vector<32x1xf32>
    %105 = tpu.reciprocal %104 {approx = true} : vector<32x1xf32> -> vector<32x1xf32>
    %106 = vector.broadcast %105 : vector<32x1xf32> to vector<32x32xf32>
    %107 = arith.mulf %102, %106 : vector<32x32xf32>
    %cst_49 = arith.constant dense<0.000000e+00> : vector<32x8xf32>
    %108 = tpu.matmul %107, %76, %cst_49 {dimension_numbers = #tpu.dot_dimension_numbers<[1], [0], [0], [1], [0, 0, 1, 1], [], []>} : vector<32x32xf32>, vector<32x8xf32>, vector<32x8xf32> -> vector<32x8xf32>
    %c0_50 = arith.constant 0 : index
    %c0_51 = arith.constant 0 : index
    %109 = vector.load %arg9[%c0_50, %c0_51] : memref<1x8xf32, #tpu.memory_space<vmem>>, vector<1x8xf32>
    %110 = vector.broadcast %109 : vector<1x8xf32> to vector<32x8xf32>
    %111 = arith.addf %108, %110 : vector<32x8xf32>
    %c0_52 = arith.constant 0 : index
    %c0_53 = arith.constant 0 : index
    %112 = vector.load %arg10[%c0_52, %c0_53] : memref<32x8xf32, #tpu.memory_space<vmem>>, vector<32x8xf32>
    tpu.vector_store %arg10[%c0_52, %c0_53], %111 {strides = array<i32>} : memref<32x8xf32, #tpu.memory_space<vmem>>, vector<32x8xf32>,
    return
  }
}

</mosaic_0001>

<bundles_post_ra>
// kernel: tpu_custom_call.1
= control target key start
LH: loop header
LB: loop body
LE: loop exit
PB: predicated region body
PF: predicated region fallthrough
CT: control target
= control target key end

     0   :  { %vm45_vm0 = vcmask 130048   ;;  %v1585_v14 = vmov 1   ;;  %v1586_v15 = vmov 0   ;;  %vm147_vm1 = vcmask 261120   ;;  %s1588_s12 = smov 16   ;;  %s1924_s2 = inlined_call_operand.vmem [shape: f32[16,32], index: 2, kind: input, shape index: {}]   ;;  %s1925_s0 = inlined_call_operand.vmem [shape: f32[32,16], index: 0, kind: input, shape index: {}]   ;;  %s1926_s4 = inlined_call_operand.vmem [shape: f32[32,2], index: 4, kind: input, shape index: {}]   ;;  %s1927_s3 = inlined_call_operand.vmem [shape: f32[32,2], index: 3, kind: input, shape index: {}]   ;;  %s1928_s1 = inlined_call_operand.vmem [shape: f32[32,32], index: 1, kind: input, shape index: {}]   ;;  %s1929_s6 = inlined_call_operand.vmem [shape: f32[32,8], index: 6, kind: input, shape index: {}]   ;;  %s1930_s5 = inlined_call_operand.vmem [shape: f32[1,32], index: 5, kind: input, shape index: {}]   ;;  %s1931_s7 = inlined_call_operand.vmem [shape: f32[8,1], index: 7, kind: input, shape index: {}]   ;;  %s1932_s8 = inlined_call_operand.vmem [shape: f32[8,1], index: 8, kind: input, shape index: {}]   ;;  %s1933_s9 = inlined_call_operand.vmem [shape: f32[1,8], index: 9, kind: input, shape index: {}]   ;;  %s1934_s10 = inlined_call_operand.vmem [shape: f32[32,8], index: 10, kind: output, shape index: {}]  }
   0x1   :  { %v44_v0 = vld [vmem:[%s1924_s2 + $0x8] sm:$0xff]  ;;  %v43_v1 = vld [vmem:[%s1924_s2] sm:$0xff]  ;;  %v248_v4 = vld [vmem:[%s1926_s4 + $0x18] sm:$0xff]  ;;  %1530 = vset.pattern.permute.xlu0 %v1585_v14  ;;  %1531 = vset.pattern.permute.xlu1 %v1586_v15  ;;  %v386_v28 = vlaneseq  ;;  %vm893_vm14 = vcmask 64512  }
   0x2   :  { %v35_v2 = vld [vmem:[%s1925_s0] sm:$0xff]  ;;  %1415 = vmatprep.subr.mxu0 %v44_v0  ;;  %v36_v3 = vld [vmem:[%s1925_s0 + $0x8] sm:$0xff]  ;;  %v146_v5 = vld [vmem:[%s1927_s3 + $0x18] sm:$0xff] }
   0x3   :  { %1419 = vmatprep.mubr.msk.f32.mxu0 %vm45_vm0, %v35_v2  ;;  %1416 = vmatpush3.msra.mxu0 %v44_v0  ;;  %v37_v6 = vld [vmem:[%s1925_s0 + $0x10] sm:$0xff]  ;;  %v38_v9 = vld [vmem:[%s1925_s0 + $0x18] sm:$0xff]  ;;  %v246_v10 = vld [vmem:[%s1926_s4 + $0x8] sm:$0xff]  ;;  %v1722_v31 = vshrl.u32 %v386_v28, 7 }
   0x4   :  { %1417 = vmatprep.subr.mxu0 %v43_v1  ;;  %1425 = vmatprep.subr.mxu1 %v146_v5  ;;  %v247_v7 = vld [vmem:[%s1926_s4 + $0x10] sm:$0xff]  ;;  %v144_v11 = vld [vmem:[%s1927_s3 + $0x8] sm:$0xff]  ;;  %v245_v12 = vld [vmem:[%s1926_s4] sm:$0xff] }
   0x5   :  { %1418 = vmatpush3.msra.mxu0 %v43_v1  ;;  %1426 = vmatpush3.msra.mxu1 %v146_v5  ;;  %v145_v8 = vld [vmem:[%s1927_s3 + $0x10] sm:$0xff]  ;;  %v143_v13 = vld [vmem:[%s1927_s3] sm:$0xff]  ;;  %v388_v33 = vsub.s32 0, %v1722_v31  ;;  %v577_v34 = vsub.s32 1, %v1722_v31  ;;  %v1733_v39 = vld [vmem:[%s1928_s1 + $0x8] sm:$0xff] }
   0x6   :  { %1420 = vmatmul.mubr.msk.f32.vlgmr.msra.gmra.mxu0 %vm45_vm0, %v36_v3  ;;  %1439 = vmatprep.subr.mxu0 %v248_v4  ;;  %v1739_v44 = vld [vmem:[%s1928_s1] sm:$0xff]  ;;  %vm407_vm2 = vcmp.gt.f32.partialorder %v1733_v39, 0.0  ;;  %v1759_v63 = vld [vmem:[%s1928_s1 + $0x18] sm:$0xff] }
   0x7   :  { %1422 = vmatprep.mubr.msk.f32.mxu0 %vm45_vm0, %v37_v6  ;;  %1440 = vmatpush3.msra.mxu0 %v248_v4  ;;  %vm406_vm6 = vcmp.gt.f32.partialorder %v1739_v44, 0.0  ;;  %vm409_vm9 = vcmp.gt.f32.partialorder %v1759_v63, 0.0 }
   0x8   :  { %1441 = vmatprep.subr.mxu0 %v247_v7  ;;  %1427 = vmatprep.subr.mxu1 %v145_v8 }
   0x9   :  { %1442 = vmatpush3.msra.mxu0 %v247_v7  ;;  %1428 = vmatpush3.msra.mxu1 %v145_v8 }
   0xa   :  { %1423 = vmatmul.mubr.msk.f32.gmra.mxu0 %vm45_vm0, %v38_v9  ;;  %1443 = vmatprep.subr.mxu0 %v246_v10 }
   0xb   :  { %1444 = vmatpush3.msra.mxu0 %v246_v10  ;;  %1429 = vmatprep.subr.mxu1 %v144_v11  ;;  %v1774_v10 = vld [vmem:[%s1928_s1 + $0x10] sm:$0xff]  ;;  %s1587_s1 = smov 112  }
   0xc   :  { %1430 = vmatpush3.msra.mxu1 %v144_v11  ;;  %1445 = vmatprep.subr.mxu0 %v245_v12  ;;  %vm408_vm12 = vcmp.gt.f32.partialorder %v1774_v10, 0.0 }
   0xd   :  { %1431 = vmatprep.subr.mxu1 %v143_v13  ;;  %1446 = vmatpush3.msra.mxu0 %v245_v12 }
   0xe   :  { %1432 = vmatpush3.msra.mxu1 %v143_v13 }
  0xc6   :  { %v1690_v16 = vpop.f32.mrf.mxu0 }
  0xc8   :  { %v1692_v17 = vpop.f32.mrf.mxu0 }
  0xc9   :  { %1433 = vmatprep.mubr.msk.f32.mxu1 %vm147_vm1, %v1692_v17  ;;  %1447 = vmatprep.mubr.msk.f32.mxu0 %vm147_vm1, %v1692_v17 }
  0xca   :  { %v1698_v18 = vpop.f32.mrf.mxu0  ;;  %1434 = vmatmul.mubr.msk.f32.vlgmr.msra.gmra.mxu1 %vm147_vm1, %v1690_v16  ;;  %1448 = vmatmul.mubr.msk.f32.vlgmr.msra.gmra.mxu0 %vm147_vm1, %v1690_v16 }
  0xcb   :  { %1453 = vmatprep.subr.mxu1 %v1698_v18 }
  0xcc   :  { %v1705_v19 = vpop.f32.mrf.mxu0  ;;  %1454 = vmatpush3.msra.mxu1 %v1698_v18 }
  0xcd   :  { %1455 = vmatprep.subr.mxu1 %v1705_v19  ;;  %1450 = vmatprep.mubr.msk.f32.mxu0 %vm147_vm1, %v1705_v19 }
  0xce   :  { %1456 = vmatpush3.msra.mxu1 %v1705_v19  ;;  %1451 = vmatmul.mubr.msk.f32.gmra.mxu0 %vm147_vm1, %v1698_v18 }
  0xcf   :  { %1457 = vmatprep.subr.mxu1 %v1690_v16  ;;  %1436 = vmatprep.mubr.msk.f32.mxu1 %vm147_vm1, %v1705_v19 }
  0xd0   :  { %1458 = vmatpush3.msra.mxu1 %v1690_v16 }
  0xd1   :  { %1459 = vmatprep.subr.mxu1 %v1692_v17  ;;  %1437 = vmatmul.mubr.msk.f32.gmra.mxu1 %vm147_vm1, %v1698_v18 }
  0xd2   :  { %1460 = vmatpush3.msra.mxu1 %v1692_v17 }
 0x18a   :  { %v1449_v20 = vpop.f32.mrf.mxu0  ;;  %v1435_v24 = vpop.f32.mrf.mxu1 }
 0x18b   :  { %373 = vperm.xlu1 %1531, %v1449_v20   ;;  %564 = vperm.xlu0 %1530, %v1449_v20  }
 0x18c   :  { %v315_v21 = vpop.f32.mrf.mxu0  ;;  %v226_v25 = vpop.f32.mrf.mxu1 }
 0x18e   :  { %v1452_v22 = vpop.f32.mrf.mxu0 }
 0x18f   :  { %368 = vperm.xlu1 %1531, %v315_v21   ;;  %560 = vperm.xlu0 %1530, %v315_v21  }
 0x190   :  { %v325_v23 = vpop.f32.mrf.mxu0 }
 0x191   :  { %v1438_v26 = vpop.f32.mrf.mxu1 }
 0x193   :  { %1532 = vset.pattern.permute.xlu1 %v1585_v14  ;;  %v236_v27 = vpop.f32.mrf.mxu1 }
 0x194   :  { %572 = vperm.xlu1 %1532, %v1452_v22  }
 0x198   :  { %1533 = vset.pattern.permute.xlu1 %v1586_v15 }
 0x199   :  { %383 = vperm.xlu1 %1533, %v1452_v22  }
 0x19d   :  { %1534 = vset.pattern.permute.xlu1 %v1585_v14 }
 0x19e   :  { %568 = vperm.xlu1 %1534, %v325_v23  }
 0x1a2   :  { %1535 = vset.pattern.permute.xlu1 %v1586_v15 }
 0x1a3   :  { %378 = vperm.xlu1 %1535, %v325_v23  }
 0x1ad   :  { %334 = vxpose.xlu0.b32.start [1/4] (short) (narrow) %v226_v25, 8 }
 0x1b1   :  { %335 = vxpose.xlu0.b32.cont [2/4] (short) (narrow) %v1435_v24, 8 }
 0x1b5   :  { %336 = vxpose.xlu0.b32.cont [3/4] (short) (narrow) %v236_v27, 8 }
 0x1b9   :  { %337 = vxpose.xlu0.b32.end [4/4] (short) (narrow) %v1438_v26, 8 }
 0x1e2   :  { %1536 = vset.pattern.permute.xlu0 %v1586_v15 }
 0x206   :  { %v565_v29 = vpop.permute.xlu0 %564  ;;  %v374_v30 = vpop.permute.xlu1 %373 }
 0x20a   :  { %v561_v32 = vpop.permute.xlu0 %560  ;;  %v369_v35 = vpop.permute.xlu1 %368 }
 0x20f   :  { %v573_v40 = vpop.permute.xlu1 %572 }
 0x214   :  { %v384_v55 = vpop.permute.xlu1 %383 }
 0x219   :  { %v569_v1 = vpop.permute.xlu1 %568 }
 0x21e   :  { %v379_v21 = vpop.permute.xlu1 %378 }
 0x229   :  { %v350_v36 = vpop.trf.xlu0 }
 0x22a   :  { %v1728_v37 = vrot.slane %v350_v36, %v388_v33  ;;  %v578_v38 = vrot.slane %v350_v36, %v577_v34 }
 0x22c   :  { %v580_v41 = vadd.f32 %v578_v38, %v565_v29  ;;  %v391_v42 = vadd.f32 %v1728_v37, %v374_v30  ;;  %v579_v43 = vadd.f32 %v578_v38, %v561_v32  ;;  %v390_v45 = vadd.f32 %v1728_v37, %v369_v35 }
 0x22d   :  { %v582_v50 = vadd.f32 %v578_v38, %v573_v40  ;;  %v393_v62 = vadd.f32 %v1728_v37, %v384_v55  ;;  %v581_v5 = vadd.f32 %v578_v38, %v569_v1  ;;  %v392_v22 = vadd.f32 %v1728_v37, %v379_v21 }
 0x22e   :  { %vm584_vm3 = vcmp.gt.f32.partialorder %v580_v41, 0.0  ;;  %v588_v46 = vmul.f32 0.2, %v580_v41  ;;  %vm395_vm4 = vcmp.gt.f32.partialorder %v391_v42, 0.0  ;;  %v399_v47 = vmul.f32 0.2, %v391_v42 }
 0x22f   :  { %vm583_vm5 = vcmp.gt.f32.partialorder %v579_v43, 0.0  ;;  %v587_v48 = vmul.f32 0.2, %v579_v43  ;;  %v398_v54 = vmul.f32 0.2, %v390_v45  ;;  %vm394_vm7 = vcmp.gt.f32.partialorder %v390_v45, 0.0 }
 0x230   :  { %v592_v49 = vsel %vm584_vm3, %v580_v41, %v588_v46  ;;  %v403_v52 = vsel %vm395_vm4, %v391_v42, %v399_v47  ;;  %v590_v61 = vmul.f32 0.2, %v582_v50  ;;  %vm586_vm8 = vcmp.gt.f32.partialorder %v582_v50, 0.0 }
 0x231   :  { %v596_v51 = vsel %vm407_vm2, %v592_v49, -1e+30  ;;  %v591_v53 = vsel %vm583_vm5, %v579_v43, %v587_v48  ;;  %v1749_v57 = vsel %vm407_vm2, %v403_v52, -1e+30  ;;  %v402_v60 = vsel %vm394_vm7, %v390_v45, %v398_v54 }
 0x232   :  { %v602_v56 = vsel %vm147_vm1, %v596_v51, -inf  ;;  %v417_v58 = vsel %vm147_vm1, %v1749_v57, -inf  ;;  %v595_v59 = vsel %vm406_vm6, %v591_v53, -1e+30  ;;  %v1764_v2 = vsel %vm406_vm6, %v402_v60, -1e+30 }
 0x233   :  { %603 = vmax.xlane.f32.xlu0 %v602_v56  ;;  %418 = vmax.xlane.f32.xlu1 %v417_v58  ;;  %v599_v0 = vsel %vm147_vm1, %v595_v59, -inf  ;;  %v594_v3 = vsel %vm586_vm8, %v582_v50, %v590_v61  ;;  %v401_v4 = vmul.f32 0.2, %v393_v62  ;;  %vm397_vm10 = vcmp.gt.f32.partialorder %v393_v62, 0.0 }
 0x234   :  { %v414_v6 = vsel %vm147_vm1, %v1764_v2, -inf  ;;  %v598_v7 = vsel %vm409_vm9, %v594_v3, -1e+30  ;;  %v589_v9 = vmul.f32 0.2, %v581_v5  ;;  %vm585_vm11 = vcmp.gt.f32.partialorder %v581_v5, 0.0 }
 0x235   :  { %v405_v8 = vsel %vm397_vm10, %v393_v62, %v401_v4  ;;  %v608_v11 = vsel %vm147_vm1, %v598_v7, -inf  ;;  %v400_v23 = vmul.f32 0.2, %v392_v22  ;;  %vm396_vm13 = vcmp.gt.f32.partialorder %v392_v22, 0.0 }
 0x236   :  { %v413_v12 = vsel %vm409_vm9, %v405_v8, -1e+30  ;;  %v593_v13 = vsel %vm585_vm11, %v581_v5, %v589_v9 }
 0x237   :  { %600 = vmax.xlane.f32.xlu1 %v599_v0  ;;  %v423_v14 = vsel %vm147_vm1, %v413_v12, -inf  ;;  %v597_v15 = vsel %vm408_vm12, %v593_v13, -1e+30  ;;  %v404_v24 = vsel %vm396_vm13, %v392_v22, %v400_v23 }
 0x238   :  { %v605_v20 = vsel %vm147_vm1, %v597_v15, -inf  ;;  %v412_v25 = vsel %vm408_vm12, %v404_v24, -1e+30 }
 0x239   :  { %v420_v26 = vsel %vm147_vm1, %v412_v25, -inf }
 0x23b   :  { %415 = vmax.xlane.f32.xlu1 %v414_v6 }
 0x23f   :  { %609 = vmax.xlane.f32.xlu1 %v608_v11 }
 0x243   :  { %424 = vmax.xlane.f32.xlu1 %v423_v14 }
 0x247   :  { %606 = vmax.xlane.f32.xlu1 %v605_v20 }
 0x258   :  { %653 = vrot.lane.b32.xlu1 %v1698_v18, %s1587_s1 }
 0x27c   :  { %421 = vmax.xlane.f32.xlu1 %v420_v26 }
 0x2bc   :  { %v604_v27 = vpop.xlane.xlu0 %603  ;;  %v419_v29 = vpop.xlane.xlu1 %418 }
 0x2bd   :  { %v612_v28 = vsub.f32 %v596_v51, %v604_v27  ;;  %v427_v11 = vsub.f32 %v1749_v57, %v419_v29 }
 0x2bf   :  { %v617_v30 = vmul.f32 1.442695, %v612_v28 }
 0x2c0   :  { %v601_v32 = vpop.xlane.xlu1 %600 }
 0x2c1   :  { %1537 = vpow2.f32 %v617_v30  ;;  %v611_v34 = vsub.f32 %v595_v59, %v601_v32 }
 0x2c3   :  { %v615_v18 = vmul.f32 1.442695, %v611_v34 }
 0x2c4   :  { %v416_v35 = vpop.xlane.xlu1 %415 }
 0x2c5   :  { %1539 = vpow2.f32 %v615_v18  ;;  %v426_v55 = vsub.f32 %v1764_v2, %v416_v35 }
 0x2c7   :  { %v430_v56 = vmul.f32 1.442695, %v426_v55 }
 0x2c8   :  { %v610_v36 = vpop.xlane.xlu1 %609 }
 0x2c9   :  { %v614_v37 = vsub.f32 %v598_v7, %v610_v36 }
 0x2cb   :  { %v621_v38 = vmul.f32 1.442695, %v614_v37 }
 0x2cc   :  { %v425_v40 = vpop.xlane.xlu1 %424 }
 0x2cd   :  { %1541 = vpow2.f32 %v621_v38  ;;  %v429_v58 = vsub.f32 %v413_v12, %v425_v40  ;;  %v432_v12 = vmul.f32 1.442695, %v427_v11 }
 0x2ce   :  { %v1538_v41 = vpop.eup %1537 }
 0x2cf   :  { %v1792_v42 = vsel %vm407_vm2, %v1538_v41, 0.0  ;;  %v436_v60 = vmul.f32 1.442695, %v429_v58  ;;  %v1333_v58 = vld [vmem:[%s1930_s5] ss:$0 sm:$0xff] }
 0x2d0   :  { %v630_v43 = vsel %vm147_vm1, %v1792_v42, 0.0  ;;  %v607_v45 = vpop.xlane.xlu1 %606 }
 0x2d1   :  { %631 = vadd.xlane.f32.xlu1 %v630_v43  ;;  %v613_v53 = vsub.f32 %v597_v15, %v607_v45 }
 0x2d2   :  { %v1540_v46 = vpop.eup %1539 }
 0x2d3   :  { %v623_v47 = vsel %vm406_vm6, %v1540_v46, 0.0  ;;  %v619_v54 = vmul.f32 1.442695, %v613_v53 }
 0x2d4   :  { %v654_v48 = vpop.permute.xlu1 %653  ;;  %v627_v49 = vsel %vm147_vm1, %v623_v47, 0.0 }
 0x2d5   :  { %628 = vadd.xlane.f32.xlu1 %v627_v49  ;;  %1467 = vmatprep.subr.mxu0 %v654_v48  ;;  %1543 = vpow2.f32 %v619_v54  ;;  %v793_v49 = vld [vmem:[%s1929_s6 + $0x10] sm:$0xff] }
 0x2d6   :  { %1468 = vmatpush3.msra.mxu0 %v654_v48  ;;  %1545 = vpow2.f32 %v430_v56  ;;  %v794_v48 = vld [vmem:[%s1929_s6 + $0x18] sm:$0xff] }
 0x2d7   :  { %1547 = vpow2.f32 %v436_v60  ;;  %1481 = vmatprep.subr.mxu1 %v794_v48 }
 0x2da   :  { %v1542_v50 = vpop.eup %1541 }
 0x2db   :  { %v1801_v51 = vsel %vm409_vm9, %v1542_v50, 0.0  ;;  %v792_v50 = vld [vmem:[%s1929_s6 + $0x8] sm:$0xff] }
 0x2dc   :  { %v636_v52 = vsel %vm147_vm1, %v1801_v51, 0.0 }
 0x2dd   :  { %637 = vadd.xlane.f32.xlu0 %v636_v52 }
 0x2e2   :  { %v1544_v59 = vpop.eup %1543 }
 0x2e3   :  { %v625_v0 = vsel %vm408_vm12, %v1544_v59, 0.0 }
 0x2e6   :  { %649 = vrot.lane.b32.xlu1 %v1690_v16, %s1587_s1  ;;  %v633_v16 = vsel %vm147_vm1, %v625_v0, 0.0 }
 0x2f3   :  { %651 = vrot.lane.b32.xlu0 %v1705_v19, %s1587_s1  ;;  %v1546_v19 = vpop.eup %1545 }
 0x2f4   :  { %v438_v2 = vsel %vm406_vm6, %v1546_v19, 0.0  ;;  %v1548_v4 = vpop.eup %1547 }
 0x2f5   :  { %v442_v3 = vsel %vm147_vm1, %v438_v2, 0.0  ;;  %v441_v8 = vsel %vm409_vm9, %v1548_v4, 0.0 }
 0x2f6   :  { %v451_v9 = vsel %vm147_vm1, %v441_v8, 0.0 }
 0x305   :  { %v422_v61 = vpop.xlane.xlu1 %421 }
 0x306   :  { %v428_v62 = vsub.f32 %v412_v25, %v422_v61 }
 0x308   :  { %v434_v1 = vmul.f32 1.442695, %v428_v62 }
 0x30a   :  { %1549 = vpow2.f32 %v434_v1  ;;  %634 = vadd.xlane.f32.xlu1 %v633_v16 }
 0x30b   :  { %1551 = vpow2.f32 %v432_v12 }
 0x312   :  { %443 = vadd.xlane.f32.xlu0 %v442_v3 }
 0x317   :  { %v1550_v5 = vpop.eup %1549 }
 0x318   :  { %v440_v6 = vsel %vm408_vm12, %v1550_v5, 0.0  ;;  %v1552_v13 = vpop.eup %1551 }
 0x319   :  { %v448_v7 = vsel %vm147_vm1, %v440_v6, 0.0  ;;  %v439_v14 = vsel %vm407_vm2, %v1552_v13, 0.0 }
 0x31a   :  { %449 = vadd.xlane.f32.xlu0 %v448_v7  ;;  %v445_v15 = vsel %vm147_vm1, %v439_v14, 0.0 }
 0x31b   :  { %647 = vrot.lane.b32.xlu1 %v1692_v17, %s1587_s1 }
 0x31e   :  { %452 = vadd.xlane.f32.xlu0 %v451_v9 }
 0x33f   :  { %446 = vadd.xlane.f32.xlu1 %v445_v15  ;;  %v991_v15 = vld [vmem:[%s1932_s8] sm:$0xff] }
 0x35a   :  { %v632_v20 = vpop.xlane.xlu1 %631 }
 0x35e   :  { %v629_v21 = vpop.xlane.xlu1 %628 }
 0x35f   :  { %1553 = vrcp.f32 %v629_v21 }
 0x360   :  { %1555 = vrcp.f32 %v632_v20 }
 0x362   :  { %v650_v24 = vpop.permute.xlu1 %649 }
 0x366   :  { %v638_v22 = vpop.xlane.xlu0 %637 }
 0x367   :  { %1557 = vrcp.f32 %v638_v22 }
 0x36a   :  { %v652_v23 = vpop.permute.xlu0 %651 }
 0x36b   :  { %1469 = vmatprep.subr.mxu0 %v652_v23 }
 0x36c   :  { %v1554_v17 = vpop.eup %1553  ;;  %1470 = vmatpush3.msra.mxu0 %v652_v23 }
 0x36d   :  { %1471 = vmatprep.subr.mxu0 %v650_v24  ;;  %v643_v57 = vmul.f32 %v1554_v17, %v623_v47  ;;  %v1556_v26 = vpop.eup %1555 }
 0x36e   :  { %1472 = vmatpush3.msra.mxu0 %v650_v24  ;;  %v644_v28 = vmul.f32 %v1556_v26, %v1792_v42 }
 0x36f   :  { %1475 = vmatprep.mubr.msk.f32.mxu0 %vm147_vm1, %v643_v57 }
 0x374   :  { %v1558_v30 = vpop.eup %1557 }
 0x375   :  { %v646_v18 = vmul.f32 %v1558_v30, %v1801_v51  ;;  %v791_v51 = vld [vmem:[%s1929_s6] sm:$0xff] }
 0x393   :  { %v635_v25 = vpop.xlane.xlu1 %634 }
 0x394   :  { %1559 = vrcp.f32 %v635_v25 }
 0x397   :  { %v648_v27 = vpop.permute.xlu1 %647 }
 0x398   :  { %1473 = vmatprep.subr.mxu0 %v648_v27 }
 0x399   :  { %1474 = vmatpush3.msra.mxu0 %v648_v27 }
 0x39a   :  { %1476 = vmatmul.mubr.msk.f32.vlgmr.msra.gmra.mxu0 %vm147_vm1, %v644_v28 }
 0x39b   :  { %v444_v29 = vpop.xlane.xlu0 %443 }
 0x39c   :  { %1561 = vrcp.f32 %v444_v29 }
 0x3a1   :  { %v1560_v32 = vpop.eup %1559 }
 0x3a2   :  { %v645_v34 = vmul.f32 %v1560_v32, %v625_v0 }
 0x3a3   :  { %v450_v37 = vpop.xlane.xlu0 %449 }
 0x3a4   :  { %1478 = vmatprep.mubr.msk.f32.mxu0 %vm147_vm1, %v645_v34  ;;  %1563 = vrcp.f32 %v450_v37 }
 0x3a5   :  { %1479 = vmatmul.mubr.msk.f32.gmra.mxu0 %vm147_vm1, %v646_v18 }
 0x3a7   :  { %v453_v38 = vpop.xlane.xlu0 %452 }
 0x3a9   :  { %v1562_v35 = vpop.eup %1561 }
 0x3aa   :  { %v458_v36 = vmul.f32 %v1562_v35, %v438_v2 }
 0x3ac   :  { %1461 = vmatprep.mubr.msk.f32.mxu1 %vm147_vm1, %v458_v36 }
 0x3b1   :  { %v1564_v41 = vpop.eup %1563 }
 0x3b2   :  { %v460_v46 = vmul.f32 %v1564_v41, %v440_v6 }
 0x3c8   :  { %v447_v40 = vpop.xlane.xlu1 %446 }
 0x3c9   :  { %1565 = vrcp.f32 %v447_v40 }
 0x3ca   :  { %1567 = vrcp.f32 %v453_v38 }
 0x3d6   :  { %v1566_v42 = vpop.eup %1565 }
 0x3d7   :  { %v459_v43 = vmul.f32 %v1566_v42, %v439_v14  ;;  %v1568_v45 = vpop.eup %1567  ;;  %v892_v14 = vld [vmem:[%s1931_s7] sm:$0xff] }
 0x3d8   :  { %v461_v47 = vmul.f32 %v1568_v45, %v441_v8  ;;  %1495 = vmatprep.subr.mxu0 %v892_v14 }
 0x3d9   :  { %1462 = vmatmul.mubr.msk.f32.vlgmr.msra.gmra.mxu1 %vm147_vm1, %v459_v43  ;;  %1496 = vmatpush3.msra.mxu0 %v892_v14 }
 0x3da   :  { %1464 = vmatprep.mubr.msk.f32.mxu1 %vm147_vm1, %v460_v46  ;;  %1482 = vmatpush3.msra.mxu1 %v794_v48 }
 0x3db   :  { %1483 = vmatprep.subr.mxu1 %v793_v49 }
 0x3dc   :  { %1484 = vmatpush3.msra.mxu1 %v793_v49 }
 0x3dd   :  { %1465 = vmatmul.mubr.msk.f32.gmra.mxu1 %vm147_vm1, %v461_v47  ;;  %1485 = vmatprep.subr.mxu1 %v792_v50 }
 0x3de   :  { %1486 = vmatpush3.msra.mxu1 %v792_v50 }
 0x3df   :  { %1487 = vmatprep.subr.mxu1 %v791_v51 }
 0x3e0   :  { %1488 = vmatpush3.msra.mxu1 %v791_v51 }
 0x3e1   :  { %1503 = vmatprep.subr.mxu1 %v991_v15 }
 0x45a   :  { %v1477_v52 = vpop.f32.mrf.mxu0 }
 0x45b   :  { %762 = vrot.lane.b32.xlu0 %v1477_v52, %s1588_s12 }
 0x45c   :  { %v737_v53 = vpop.f32.mrf.mxu0 }
 0x45d   :  { %760 = vrot.lane.b32.xlu1 %v737_v53, %s1588_s12 }
 0x465   :  { %v1480_v54 = vpop.f32.mrf.mxu0 }
 0x467   :  { %v747_v55 = vpop.f32.mrf.mxu0 }
 0x468   :  { %764 = vrot.lane.b32.xlu1 %v747_v55, %s1588_s12 }
 0x46c   :  { %766 = vrot.lane.b32.xlu1 %v1480_v54, %s1588_s12 }
 0x499   :  { %v1463_v56 = vpop.f32.mrf.mxu1 }
 0x49b   :  { %v540_v61 = vpop.f32.mrf.mxu1 }
 0x49d   :  { %v1466_v3 = vpop.f32.mrf.mxu1 }
 0x49f   :  { %v550_v4 = vpop.f32.mrf.mxu1 }
 0x4cd   :  { %v763_v59 = vpop.permute.xlu0 %762 }
 0x4ce   :  { %v773_v60 = vsel %vm45_vm0, %v1463_v56, %v763_v59 }
 0x4cf   :  { %v761_v62 = vpop.permute.xlu1 %760  ;;  %v784_v0 = vadd.f32 %v1333_v58, %v773_v60 }
 0x4d0   :  { %v772_v1 = vsel %vm45_vm0, %v540_v61, %v761_v62 }
 0x4d1   :  { %v783_v16 = vadd.f32 %v1333_v58, %v772_v1  ;;  %v788_v2 = vmax.f32 %v784_v0, 0.0 }
 0x4d3   :  { %v787_v19 = vmax.f32 %v783_v16, 0.0 }
 0x4d5   :  { %1489 = vmatprep.mubr.msk.f32.mxu1 %vm147_vm1, %v787_v19 }
 0x4d6   :  { %1490 = vmatmul.mubr.msk.f32.vlgmr.msra.gmra.mxu1 %vm147_vm1, %v788_v2 }
 0x4d7   :  { %1504 = vmatpush3.msra.mxu1 %v991_v15 }
 0x4da   :  { %v765_v5 = vpop.permute.xlu1 %764 }
 0x4db   :  { %v774_v6 = vsel %vm45_vm0, %v550_v4, %v765_v5 }
 0x4dc   :  { %v785_v7 = vadd.f32 %v1333_v58, %v774_v6 }
 0x4de   :  { %v789_v8 = vmax.f32 %v785_v7, 0.0  ;;  %v767_v9 = vpop.permute.xlu1 %766 }
 0x4df   :  { %v775_v11 = vsel %vm45_vm0, %v1466_v3, %v767_v9 }
 0x4e0   :  { %v786_v12 = vadd.f32 %v1333_v58, %v775_v11  ;;  %1492 = vmatprep.mubr.msk.f32.mxu1 %vm147_vm1, %v789_v8 }
 0x4e2   :  { %v790_v13 = vmax.f32 %v786_v12, 0.0 }
 0x4e4   :  { %1493 = vmatmul.mubr.msk.f32.gmra.mxu1 %vm147_vm1, %v790_v13 }
 0x596   :  { %v1491_v20 = vpop.f32.mrf.mxu1 }
 0x598   :  { %v873_v21 = vpop.f32.mrf.mxu1 }
 0x599   :  { %1497 = vmatprep.mubr.msk.f32.mxu0 %vm893_vm14, %v873_v21  ;;  %1505 = vmatprep.mubr.msk.f32.mxu1 %vm893_vm14, %v873_v21 }
 0x59a   :  { %1498 = vmatmul.mubr.msk.f32.vlgmr.msra.gmra.mxu0 %vm893_vm14, %v1491_v20  ;;  %1506 = vmatmul.mubr.msk.f32.vlgmr.msra.gmra.mxu1 %vm893_vm14, %v1491_v20 }
 0x5a4   :  { %v1494_v22 = vpop.f32.mrf.mxu1 }
 0x5a5   :  { %1511 = vmatprep.subr.mxu0 %v1494_v22 }
 0x5a6   :  { %v883_v23 = vpop.f32.mrf.mxu1  ;;  %1512 = vmatpush3.msra.mxu0 %v1494_v22 }
 0x5a7   :  { %1500 = vmatprep.mubr.msk.f32.mxu0 %vm893_vm14, %v883_v23  ;;  %1508 = vmatprep.mubr.msk.f32.mxu1 %vm893_vm14, %v883_v23 }
 0x5a8   :  { %1513 = vmatprep.subr.mxu0 %v883_v23  ;;  %1501 = vmatmul.mubr.msk.f32.gmra.mxu0 %vm893_vm14, %v1494_v22 }
 0x5a9   :  { %1509 = vmatmul.mubr.msk.f32.gmra.mxu1 %vm893_vm14, %v1494_v22  ;;  %1514 = vmatpush3.msra.mxu0 %v883_v23 }
 0x5aa   :  { %1515 = vmatprep.subr.mxu0 %v1491_v20 }
 0x5ab   :  { %1516 = vmatpush3.msra.mxu0 %v1491_v20 }
 0x5ac   :  { %1517 = vmatprep.subr.mxu0 %v873_v21 }
 0x5ad   :  { %1518 = vmatpush3.msra.mxu0 %v873_v21 }
 0x65a   :  { %v1507_v17 = vpop.f32.mrf.mxu1  ;;  %v1499_v26 = vpop.f32.mrf.mxu0 }
 0x65b   :  { %1116 = vperm.xlu1 %1535, %v1507_v17  }
 0x65c   :  { %v1058_v24 = vpop.f32.mrf.mxu1  ;;  %v972_v27 = vpop.f32.mrf.mxu0 }
 0x65d   :  { %1111 = vperm.xlu0 %1536, %v1058_v24  }
 0x668   :  { %v1502_v28 = vpop.f32.mrf.mxu0 }
 0x669   :  { %v1510_v57 = vpop.f32.mrf.mxu1 }
 0x66a   :  { %1126 = vperm.xlu0 %1536, %v1510_v57   ;;  %v982_v29 = vpop.f32.mrf.mxu0 }
 0x66b   :  { %v1068_v25 = vpop.f32.mrf.mxu1 }
 0x66c   :  { %1121 = vperm.xlu1 %1535, %v1068_v25  }
 0x695   :  { %1077 = vxpose.xlu1.b32.start [1/4] (short) (narrow) %v972_v27, 8 }
 0x699   :  { %1078 = vxpose.xlu1.b32.cont [2/4] (short) (narrow) %v1499_v26, 8 }
 0x69d   :  { %1079 = vxpose.xlu1.b32.cont [3/4] (short) (narrow) %v982_v29, 8 }
 0x6a1   :  { %1080 = vxpose.xlu1.b32.end [4/4] (short) (narrow) %v1502_v28, 8  ;;  %v1346_v28 = vld [vmem:[%s1933_s9] ss:$0 sm:$0xff] }
 0x6d6   :  { %v1117_v30 = vpop.permute.xlu1 %1116 }
 0x6d8   :  { %v1112_v35 = vpop.permute.xlu0 %1111 }
 0x6e5   :  { %v1127_v42 = vpop.permute.xlu0 %1126 }
 0x6e7   :  { %v1122_v32 = vpop.permute.xlu1 %1121 }
 0x711   :  { %v1093_v34 = vpop.trf.xlu1 }
 0x712   :  { %v1132_v18 = vrot.slane %v1093_v34, %v388_v33 }
 0x714   :  { %v1134_v36 = vadd.f32 %v1132_v18, %v1117_v30  ;;  %v1133_v37 = vadd.f32 %v1132_v18, %v1112_v35  ;;  %v1135_v38 = vadd.f32 %v1132_v18, %v1122_v32  ;;  %v1136_v47 = vadd.f32 %v1132_v18, %v1127_v42 }
 0x716   :  { %vm1138_vm15 = vcmp.gt.f32.partialorder %v1134_v36, 0.0  ;;  %v1142_v40 = vmul.f32 0.2, %v1134_v36  ;;  %vm1137_vm0 = vcmp.gt.f32.partialorder %v1133_v37, 0.0  ;;  %v1141_v41 = vmul.f32 0.2, %v1133_v37 }
 0x717   :  { %v1143_v46 = vmul.f32 0.2, %v1135_v38  ;;  %vm1139_vm3 = vcmp.gt.f32.partialorder %v1135_v38, 0.0  ;;  %v1144_v50 = vmul.f32 0.2, %v1136_v47  ;;  %vm1140_vm4 = vcmp.gt.f32.partialorder %v1136_v47, 0.0 }
 0x718   :  { %v1146_v43 = vsel %vm1138_vm15, %v1134_v36, %v1142_v40  ;;  %v1145_v45 = vsel %vm1137_vm0, %v1133_v37, %v1141_v41 }
 0x719   :  { %v1150_v48 = vsel %vm407_vm2, %v1146_v43, -1e+30  ;;  %v1149_v33 = vsel %vm406_vm6, %v1145_v45, -1e+30  ;;  %v1147_v49 = vsel %vm1139_vm3, %v1135_v38, %v1143_v46  ;;  %v1148_v53 = vsel %vm1140_vm4, %v1136_v47, %v1144_v50 }
 0x71a   :  { %v1156_v31 = vsel %vm147_vm1, %v1150_v48, -inf  ;;  %v1153_v51 = vsel %vm147_vm1, %v1149_v33, -inf  ;;  %v1151_v52 = vsel %vm408_vm12, %v1147_v49, -1e+30  ;;  %v1152_v55 = vsel %vm409_vm9, %v1148_v53, -1e+30 }
 0x71b   :  { %1157 = vmax.xlane.f32.xlu0 %v1156_v31  ;;  %v1159_v54 = vsel %vm147_vm1, %v1151_v52, -inf  ;;  %v1162_v56 = vsel %vm147_vm1, %v1152_v55, -inf }
 0x71f   :  { %1154 = vmax.xlane.f32.xlu0 %v1153_v51 }
 0x723   :  { %1160 = vmax.xlane.f32.xlu0 %v1159_v54 }
 0x727   :  { %1163 = vmax.xlane.f32.xlu0 %v1162_v56 }
 0x7a4   :  { %v1158_v58 = vpop.xlane.xlu0 %1157 }
 0x7a5   :  { %v1166_v59 = vsub.f32 %v1150_v48, %v1158_v58 }
 0x7a7   :  { %v1171_v60 = vmul.f32 1.442695, %v1166_v59 }
 0x7a8   :  { %v1155_v61 = vpop.xlane.xlu0 %1154 }
 0x7a9   :  { %v1165_v62 = vsub.f32 %v1149_v33, %v1155_v61  ;;  %1569 = vpow2.f32 %v1171_v60 }
 0x7ab   :  { %v1169_v0 = vmul.f32 1.442695, %v1165_v62 }
 0x7ac   :  { %v1161_v1 = vpop.xlane.xlu0 %1160 }
 0x7ad   :  { %1571 = vpow2.f32 %v1169_v0  ;;  %v1167_v16 = vsub.f32 %v1151_v52, %v1161_v1 }
 0x7af   :  { %v1173_v19 = vmul.f32 1.442695, %v1167_v16 }
 0x7b0   :  { %v1164_v2 = vpop.xlane.xlu0 %1163 }
 0x7b1   :  { %1573 = vpow2.f32 %v1173_v19  ;;  %v1168_v3 = vsub.f32 %v1152_v55, %v1164_v2 }
 0x7b3   :  { %v1175_v4 = vmul.f32 1.442695, %v1168_v3 }
 0x7b5   :  { %1575 = vpow2.f32 %v1175_v4 }
 0x7b6   :  { %v1570_v5 = vpop.eup %1569 }
 0x7b7   :  { %v1178_v9 = vsel %vm407_vm2, %v1570_v5, 0.0 }
 0x7b8   :  { %v1184_v13 = vsel %vm147_vm1, %v1178_v9, 0.0 }
 0x7ba   :  { %v1572_v6 = vpop.eup %1571 }
 0x7bb   :  { %v1177_v7 = vsel %vm406_vm6, %v1572_v6, 0.0 }
 0x7bc   :  { %v1181_v8 = vsel %vm147_vm1, %v1177_v7, 0.0 }
 0x7bd   :  { %1182 = vadd.xlane.f32.xlu0 %v1181_v8 }
 0x7be   :  { %v1574_v11 = vpop.eup %1573 }
 0x7bf   :  { %v1179_v12 = vsel %vm408_vm12, %v1574_v11, 0.0 }
 0x7c0   :  { %v1187_v14 = vsel %vm147_vm1, %v1179_v12, 0.0 }
 0x7c1   :  { %1185 = vadd.xlane.f32.xlu0 %v1184_v13  ;;  %1188 = vadd.xlane.f32.xlu1 %v1187_v14 }
 0x7c2   :  { %v1576_v15 = vpop.eup %1575 }
 0x7c3   :  { %v1180_v44 = vsel %vm409_vm9, %v1576_v15, 0.0 }
 0x7c4   :  { %v1190_v20 = vsel %vm147_vm1, %v1180_v44, 0.0 }
 0x7c5   :  { %1191 = vadd.xlane.f32.xlu0 %v1190_v20 }
 0x846   :  { %v1183_v21 = vpop.xlane.xlu0 %1182 }
 0x847   :  { %1577 = vrcp.f32 %v1183_v21 }
 0x84a   :  { %v1189_v39 = vpop.xlane.xlu1 %1188  ;;  %v1186_v22 = vpop.xlane.xlu0 %1185 }
 0x84b   :  { %1579 = vrcp.f32 %v1189_v39 }
 0x84c   :  { %1581 = vrcp.f32 %v1186_v22 }
 0x84e   :  { %v1192_v10 = vpop.xlane.xlu0 %1191 }
 0x84f   :  { %1583 = vrcp.f32 %v1192_v10 }
 0x854   :  { %v1578_v23 = vpop.eup %1577 }
 0x855   :  { %v1197_v17 = vmul.f32 %v1578_v23, %v1177_v7 }
 0x857   :  { %1519 = vmatprep.mubr.msk.f32.mxu0 %vm147_vm1, %v1197_v17 }
 0x858   :  { %v1580_v24 = vpop.eup %1579 }
 0x859   :  { %v1582_v57 = vpop.eup %1581  ;;  %v1199_v25 = vmul.f32 %v1580_v24, %v1179_v12 }
 0x85a   :  { %v1198_v63 = vmul.f32 %v1582_v57, %v1178_v9 }
 0x85c   :  { %v1584_v26 = vpop.eup %1583  ;;  %1520 = vmatmul.mubr.msk.f32.vlgmr.msra.gmra.mxu0 %vm147_vm1, %v1198_v63 }
 0x85d   :  { %1522 = vmatprep.mubr.msk.f32.mxu0 %vm147_vm1, %v1199_v25  ;;  %v1200_v27 = vmul.f32 %v1584_v26, %v1180_v44 }
 0x860   :  { %1523 = vmatmul.mubr.msk.f32.gmra.mxu0 %vm147_vm1, %v1200_v27 }
 0x91c   :  { %v1521_v29 = vpop.f32.mrf.mxu0 }
 0x91d   :  { %v1292_v30 = vadd.f32 %v1521_v29, %v1346_v28 }
 0x91e   :  { %v1286_v32 = vpop.f32.mrf.mxu0 }
 0x91f   :  { %1306 = vst.msk [vmem:[%s1934_s10 + $0x8] sm:$0xff] %vm893_vm14, %v1292_v30  ;;  %v1287_v34 = vadd.f32 %v1346_v28, %v1286_v32 }
 0x920   :  { %v1524_v18 = vpop.f32.mrf.mxu0 }
 0x921   :  { %1305 = vst.msk [vmem:[%s1934_s10] sm:$0xff] %vm893_vm14, %v1287_v34  ;;  %v1302_v35 = vadd.f32 %v1524_v18, %v1346_v28 }
 0x922   :  { %v1296_v36 = vpop.f32.mrf.mxu0 }
 0x923   :  { %1308 = vst.msk [vmem:[%s1934_s10 + $0x18] sm:$0xff] %vm893_vm14, %v1302_v35  ;;  %v1297_v37 = vadd.f32 %v1346_v28, %v1296_v36 }
 0x925   :  { %1307 = vst.msk [vmem:[%s1934_s10 + $0x10] sm:$0xff] %vm893_vm14, %v1297_v37 }

</bundles_post_ra>
